<compile_context>
chip_gen: v7x
topology: tpu7x:2x2x1
jax: 0.10.0
libtpu: 0.0.40
codegen_flags: <defaults>
</compile_context>

<pallas_src>
import jax
import jax.numpy as jnp
from jax.experimental import pallas as pl
from jax.experimental.pallas import tpu as pltpu


def torso_gcn_kernel(inv_wmax_ref, x_ref, adj_ref,
                     w1_ref, b1_ref, w2_ref, b2_ref, w3_ref, b3_ref,
                     wl_ref, bl_ref, out_ref):
    bb, n, _ = x_ref.shape
    s = inv_wmax_ref[0]                      # scalar 1/max(adj) (1.0 if no edges)

    adj = adj_ref[...]                       # (bb, N, N) raw edge weights
    # deg = rowsum(s*A + I) = s*rowsum(A) + 1 ;  dinv = deg^-1/2  (deg >= 1)
    deg = s * jnp.sum(adj, axis=2, keepdims=True) + 1.0          # (bb, N, 1)
    dinv = jax.lax.rsqrt(deg)                                    # (bb, N, 1)

    def gcn_layer(h, w_ref, b_ref):
        fout = w_ref.shape[1]
        # flatten (bb, N, Fin) -> (bb*N, Fin) so the MXU sees a tall GEMM
        hw = jnp.dot(h.reshape(bb * n, h.shape[-1]), w_ref[...],
                     preferred_element_type=jnp.float32).reshape(bb, n, fout)
        dhw = dinv * hw                      # shared by A@v and the self-loop term
        agg = jnp.einsum('bij,bjf->bif', adj, dhw,
                         preferred_element_type=jnp.float32)
        # D^-1/2 (sA + I) D^-1/2 (hW) + b, without forming A_norm
        return dinv * (s * agg + dhw) + b_ref[...]

    h = jnp.maximum(gcn_layer(x_ref[...], w1_ref, b1_ref), 0.0)
    h = jnp.maximum(gcn_layer(h, w2_ref, b2_ref), 0.0)
    h = jnp.maximum(gcn_layer(h, w3_ref, b3_ref), 0.0)

    # global_mean_pool over the nodes of each graph -> (bb, hidden//4)
    g = jnp.mean(h, axis=1)

    # final Linear as a single (bb, hid/4) x (hid/4, out_dim) GEMM,
    # stored as one lane/sublane-dense (bb, out_dim) slab.
    out_ref[0] = jnp.dot(g, wl_ref[...],
                         preferred_element_type=jnp.float32) + bl_ref[...]


def _pick_block_b(B, N, max_rows=512):
    """Largest bb dividing B with bb*N <= max_rows and (for B>1) >= 2 grid steps."""
    best = 1
    for bb in range(1, B + 1):
        if B % bb:
            continue
        if bb * N > max_rows:
            continue
        if B > 1 and B // bb < 2:
            continue
        best = bb
    return best


def torso_gcn_v2(x, adj, params, S, c, block_b=None):
    """x: (B, N, F_in) f32, adj: (B, N, N) f32 dense edge weights."""
    B, N, Fin = x.shape
    w1, b1, w2, b2, w3, b3, wl, bl = params
    out_dim = wl.shape[1]
    dim1, dim2 = 3 * S * S, c
    assert out_dim == dim1 * dim2
    x = x.astype(jnp.float32)
    adj = adj.astype(jnp.float32)

    bb = block_b if block_b is not None else _pick_block_b(B, N)
    assert B % bb == 0
    nblk = B // bb

    # edge_weights = edge_attr / edge_attr.max(); guard an all-zero adjacency.
    wmax = jnp.max(adj)
    inv_wmax = jnp.where(wmax > 0, 1.0 / wmax, 1.0).reshape(1).astype(jnp.float32)

    # Explicit VMEM budget: double-buffered x/adj/out blocks + resident params
    # + activation headroom, clamped to be safe on v7x (64 MiB physical).
    itemsize = 4
    blk_bytes = 2 * bb * (N * N + N * Fin + out_dim) * itemsize
    par_bytes = 2 * sum(int(p.size) for p in params) * itemsize
    act_bytes = 8 * bb * N * max(Fin, w1.shape[1]) * itemsize
    vmem_limit = int(min(64 * 2**20,
                         max(16 * 2**20, 2 * (blk_bytes + par_bytes + act_bytes))))

    full2 = lambda b: (0, 0)
    out = pl.pallas_call(
        torso_gcn_kernel,
        out_shape=jax.ShapeDtypeStruct((nblk, bb, out_dim), jnp.float32),
        grid_spec=pltpu.PrefetchScalarGridSpec(
            num_scalar_prefetch=0,
            grid=(nblk,),                                          # bb graphs per step
            in_specs=[
                pl.BlockSpec(memory_space=pltpu.MemorySpace.SMEM),  # 1/wmax scalar
                pl.BlockSpec((bb, N, Fin), lambda b: (b, 0, 0)),    # x
                pl.BlockSpec((bb, N, N), lambda b: (b, 0, 0)),      # adj
                pl.BlockSpec(w1.shape, full2), pl.BlockSpec(b1.shape, full2),
                pl.BlockSpec(w2.shape, full2), pl.BlockSpec(b2.shape, full2),
                pl.BlockSpec(w3.shape, full2), pl.BlockSpec(b3.shape, full2),
                pl.BlockSpec(wl.shape, full2), pl.BlockSpec(bl.shape, full2),
            ],
            out_specs=pl.BlockSpec((1, bb, out_dim), lambda b: (b, 0, 0)),
        ),
        compiler_params=pltpu.CompilerParams(
            dimension_semantics=("parallel",),
            vmem_limit_bytes=vmem_limit),
    )(inv_wmax, x, adj, w1, b1, w2, b2, w3, b3, wl, bl)

    # final .view(batch_size, dim1, dim2)
    return out.reshape(B, dim1, dim2)


def torso_gcn_reference(x, adj, params, S, c):
    """Pure-JAX reference (same dense-graph semantics) for a correctness check."""
    w1, b1, w2, b2, w3, b3, wl, bl = params
    B, N, _ = x.shape
    wmax = jnp.max(adj)
    s = jnp.where(wmax > 0, 1.0 / wmax, 1.0)
    a_sl = s * adj + jnp.eye(N, dtype=jnp.float32)[None]
    deg = jnp.sum(a_sl, axis=2, keepdims=True)
    dinv = 1.0 / jnp.sqrt(deg)
    a_norm = dinv * a_sl * jnp.swapaxes(dinv, 1, 2)

    def layer(h, w, b):
        return jnp.einsum('bij,bjf->bif', a_norm, h @ w) + b

    h = jax.nn.relu(layer(x, w1, b1))
    h = jax.nn.relu(layer(h, w2, b2))
    h = jax.nn.relu(layer(h, w3, b3))
    g = jnp.mean(h, axis=1)
    out = g @ wl + bl
    return out.reshape(B, 3 * S * S, c)


def init_params(key, input_dim, hidden_dim, S, c):
    out_dim = 3 * S * S * c
    layer_dims = [
        (input_dim, hidden_dim),             # conv1
        (hidden_dim, hidden_dim // 2),       # conv2
        (hidden_dim // 2, hidden_dim // 4),  # conv3
        (hidden_dim // 4, out_dim),          # lin
    ]
    params = []
    for fin, fout in layer_dims:
        key, kw, kb = jax.random.split(key, 3)
        scale = 1.0 / (fin ** 0.5)
        w = jax.random.uniform(kw, (fin, fout), jnp.float32, -scale, scale)
        b = jax.random.uniform(kb, (1, fout), jnp.float32, -scale, scale)
        params += [w, b]
    return params


if __name__ == "__main__":
    key = jax.random.PRNGKey(0)
    k_x, k_a, k_p = jax.random.split(key, 3)

    B, N = 2, 16                       # 2 graphs, 16 nodes each
    input_dim, hidden_dim, S, c = 16, 32, 4, 4

    x = jax.random.normal(k_x, (B, N, input_dim), jnp.float32)

    # symmetric positive edge weights, zero diagonal (self loops added in-kernel)
    a = jax.random.uniform(k_a, (B, N, N), jnp.float32, 0.1, 2.0)
    adj = 0.5 * (a + jnp.swapaxes(a, 1, 2))
    adj = adj * (1.0 - jnp.eye(N, dtype=jnp.float32)[None])

    params = init_params(k_p, input_dim, hidden_dim, S, c)

    ee = torso_gcn_v2(x, adj, params, S, c)
    jax.block_until_ready(ee)
    assert ee.shape == (B, 3 * S * S, c)
    assert ee.dtype == jnp.float32

    with jax.default_matmul_precision("highest"):
        ref = torso_gcn_reference(x, adj, params, S, c)
    err = float(jnp.max(jnp.abs(ee - ref)))
    assert err < 2e-2, f"max abs err {err}"

    print("KERNEL_OK")
</pallas_src>

<mosaic_0001>
module attributes {stable_mosaic.version = 11 : i64} {
  func.func @torso_gcn_kernel(%arg0: i32, %arg1: memref<1xf32, #tpu.memory_space<smem>>, %arg2: memref<1x16x16xf32, #tpu.memory_space<vmem>>, %arg3: memref<1x16x16xf32, #tpu.memory_space<vmem>>, %arg4: memref<16x32xf32, #tpu.memory_space<vmem>>, %arg5: memref<1x32xf32, #tpu.memory_space<vmem>>, %arg6: memref<32x16xf32, #tpu.memory_space<vmem>>, %arg7: memref<1x16xf32, #tpu.memory_space<vmem>>, %arg8: memref<16x8xf32, #tpu.memory_space<vmem>>, %arg9: memref<1x8xf32, #tpu.memory_space<vmem>>, %arg10: memref<8x192xf32, #tpu.memory_space<vmem>>, %arg11: memref<1x192xf32, #tpu.memory_space<vmem>>, %arg12: memref<1x1x192xf32, #tpu.memory_space<vmem>>) attributes {dimension_semantics = [#tpu.dimension_semantics<parallel>], iteration_bounds = array<i64: 2>, scalar_prefetch = 0 : i64, scratch_operands = 0 : i64, tpu.core_type = #tpu.core_type<tc>, window_params = [{transform_indices = @transform_0, window_bounds = array<i64: 1>}, {transform_indices = @transform_1, window_bounds = array<i64: 1, 16, 16>}, {transform_indices = @transform_2, window_bounds = array<i64: 1, 16, 16>}, {pipeline_mode = #tpu.pipeline_mode<synchronous>, transform_indices = @transform_3, window_bounds = array<i64: 16, 32>}, {pipeline_mode = #tpu.pipeline_mode<synchronous>, transform_indices = @transform_4, window_bounds = array<i64: 1, 32>}, {pipeline_mode = #tpu.pipeline_mode<synchronous>, transform_indices = @transform_5, window_bounds = array<i64: 32, 16>}, {pipeline_mode = #tpu.pipeline_mode<synchronous>, transform_indices = @transform_6, window_bounds = array<i64: 1, 16>}, {pipeline_mode = #tpu.pipeline_mode<synchronous>, transform_indices = @transform_7, window_bounds = array<i64: 16, 8>}, {pipeline_mode = #tpu.pipeline_mode<synchronous>, transform_indices = @transform_8, window_bounds = array<i64: 1, 8>}, {pipeline_mode = #tpu.pipeline_mode<synchronous>, transform_indices = @transform_9, window_bounds = array<i64: 8, 192>}, {pipeline_mode = #tpu.pipeline_mode<synchronous>, transform_indices = @transform_10, window_bounds = array<i64: 1, 192>}, {transform_indices = @transform_11, window_bounds = array<i64: 1, 1, 192>}]} {
    %c0 = arith.constant 0 : index
    %0 = memref.load %arg1[%c0] : memref<1xf32, #tpu.memory_space<smem>>
    %c0_0 = arith.constant 0 : index
    %c0_1 = arith.constant 0 : index
    %c0_2 = arith.constant 0 : index
    %1 = vector.load %arg3[%c0_0, %c0_1, %c0_2] : memref<1x16x16xf32, #tpu.memory_space<vmem>>, vector<1x16x16xf32>
    %cst = arith.constant dense<0.000000e+00> : vector<1x16xf32>
    %2 = vector.multi_reduction <add>, %1, %cst [2] : vector<1x16x16xf32> to vector<1x16xf32>
    %3 = vector.shape_cast %2 : vector<1x16xf32> to vector<1x16x1xf32>
    %4 = vector.broadcast %0 : f32 to vector<1x16x1xf32>
    %5 = arith.mulf %4, %3 : vector<1x16x1xf32>
    %cst_3 = arith.constant 1.000000e+00 : f32
    %6 = vector.broadcast %cst_3 : f32 to vector<1x16x1xf32>
    %7 = arith.addf %5, %6 : vector<1x16x1xf32>
    %8 = math.rsqrt %7 : vector<1x16x1xf32>
    %c0_4 = arith.constant 0 : index
    %c0_5 = arith.constant 0 : index
    %c0_6 = arith.constant 0 : index
    %9 = vector.load %arg2[%c0_4, %c0_5, %c0_6] : memref<1x16x16xf32, #tpu.memory_space<vmem>>, vector<1x16x16xf32>
    %10 = vector.shape_cast %9 : vector<1x16x16xf32> to vector<16x16xf32>
    %c0_7 = arith.constant 0 : index
    %c0_8 = arith.constant 0 : index
    %11 = vector.load %arg4[%c0_7, %c0_8] : memref<16x32xf32, #tpu.memory_space<vmem>>, vector<16x32xf32>
    %cst_9 = arith.constant dense<0.000000e+00> : vector<16x32xf32>
    %12 = tpu.matmul %10, %11, %cst_9 {dimension_numbers = #tpu.dot_dimension_numbers<[1], [0], [0], [1], [0, 0, 1, 1], [], []>} : vector<16x16xf32>, vector<16x32xf32>, vector<16x32xf32> -> vector<16x32xf32>
    %13 = vector.shape_cast %12 : vector<16x32xf32> to vector<1x16x32xf32>
    %14 = vector.broadcast %8 : vector<1x16x1xf32> to vector<1x16x32xf32>
    %15 = arith.mulf %14, %13 : vector<1x16x32xf32>
    "tpu.trace_start"() <{level = 10 : i32, message = "bij,bjf->bif"}> : () -> ()
    %cst_10 = arith.constant dense<0.000000e+00> : vector<1x16x32xf32>
    %16 = tpu.matmul %1, %15, %cst_10 {dimension_numbers = #tpu.dot_dimension_numbers<[2], [1], [1], [2], [0, 0, 0, 1, 1, 2], [0], [0]>} : vector<1x16x16xf32>, vector<1x16x32xf32>, vector<1x16x32xf32> -> vector<1x16x32xf32>
    "tpu.trace_stop"() : () -> ()
    %17 = vector.broadcast %0 : f32 to vector<1x16x32xf32>
    %18 = arith.mulf %17, %16 : vector<1x16x32xf32>
    %19 = arith.addf %18, %15 : vector<1x16x32xf32>
    %20 = vector.broadcast %8 : vector<1x16x1xf32> to vector<1x16x32xf32>
    %21 = arith.mulf %20, %19 : vector<1x16x32xf32>
    %c0_11 = arith.constant 0 : index
    %c0_12 = arith.constant 0 : index
    %22 = vector.load %arg5[%c0_11, %c0_12] : memref<1x32xf32, #tpu.memory_space<vmem>>, vector<1x32xf32>
    %23 = vector.shape_cast %22 : vector<1x32xf32> to vector<1x1x32xf32>
    %24 = vector.broadcast %23 : vector<1x1x32xf32> to vector<1x16x32xf32>
    %25 = arith.addf %21, %24 : vector<1x16x32xf32>
    %cst_13 = arith.constant 0.000000e+00 : f32
    %26 = vector.broadcast %cst_13 : f32 to vector<1x16x32xf32>
    %27 = arith.maximumf %25, %26 : vector<1x16x32xf32>
    %28 = vector.shape_cast %27 : vector<1x16x32xf32> to vector<16x32xf32>
    %c0_14 = arith.constant 0 : index
    %c0_15 = arith.constant 0 : index
    %29 = vector.load %arg6[%c0_14, %c0_15] : memref<32x16xf32, #tpu.memory_space<vmem>>, vector<32x16xf32>
    %cst_16 = arith.constant dense<0.000000e+00> : vector<16x16xf32>
    %30 = tpu.matmul %28, %29, %cst_16 {dimension_numbers = #tpu.dot_dimension_numbers<[1], [0], [0], [1], [0, 0, 1, 1], [], []>} : vector<16x32xf32>, vector<32x16xf32>, vector<16x16xf32> -> vector<16x16xf32>
    %31 = vector.shape_cast %30 : vector<16x16xf32> to vector<1x16x16xf32>
    %32 = vector.broadcast %8 : vector<1x16x1xf32> to vector<1x16x16xf32>
    %33 = arith.mulf %32, %31 : vector<1x16x16xf32>
    "tpu.trace_start"() <{level = 10 : i32, message = "bij,bjf->bif"}> : () -> ()
    %cst_17 = arith.constant dense<0.000000e+00> : vector<1x16x16xf32>
    %34 = tpu.matmul %1, %33, %cst_17 {dimension_numbers = #tpu.dot_dimension_numbers<[2], [1], [1], [2], [0, 0, 0, 1, 1, 2], [0], [0]>} : vector<1x16x16xf32>, vector<1x16x16xf32>, vector<1x16x16xf32> -> vector<1x16x16xf32>
    "tpu.trace_stop"() : () -> ()
    %35 = vector.broadcast %0 : f32 to vector<1x16x16xf32>
    %36 = arith.mulf %35, %34 : vector<1x16x16xf32>
    %37 = arith.addf %36, %33 : vector<1x16x16xf32>
    %38 = vector.broadcast %8 : vector<1x16x1xf32> to vector<1x16x16xf32>
    %39 = arith.mulf %38, %37 : vector<1x16x16xf32>
    %c0_18 = arith.constant 0 : index
    %c0_19 = arith.constant 0 : index
    %40 = vector.load %arg7[%c0_18, %c0_19] : memref<1x16xf32, #tpu.memory_space<vmem>>, vector<1x16xf32>
    %41 = vector.shape_cast %40 : vector<1x16xf32> to vector<1x1x16xf32>
    %42 = vector.broadcast %41 : vector<1x1x16xf32> to vector<1x16x16xf32>
    %43 = arith.addf %39, %42 : vector<1x16x16xf32>
    %cst_20 = arith.constant 0.000000e+00 : f32
    %44 = vector.broadcast %cst_20 : f32 to vector<1x16x16xf32>
    %45 = arith.maximumf %43, %44 : vector<1x16x16xf32>
    %46 = vector.shape_cast %45 : vector<1x16x16xf32> to vector<16x16xf32>
    %c0_21 = arith.constant 0 : index
    %c0_22 = arith.constant 0 : index
    %47 = vector.load %arg8[%c0_21, %c0_22] : memref<16x8xf32, #tpu.memory_space<vmem>>, vector<16x8xf32>
    %cst_23 = arith.constant dense<0.000000e+00> : vector<16x8xf32>
    %48 = tpu.matmul %46, %47, %cst_23 {dimension_numbers = #tpu.dot_dimension_numbers<[1], [0], [0], [1], [0, 0, 1, 1], [], []>} : vector<16x16xf32>, vector<16x8xf32>, vector<16x8xf32> -> vector<16x8xf32>
    %49 = vector.shape_cast %48 : vector<16x8xf32> to vector<1x16x8xf32>
    %50 = vector.broadcast %8 : vector<1x16x1xf32> to vector<1x16x8xf32>
    %51 = arith.mulf %50, %49 : vector<1x16x8xf32>
    "tpu.trace_start"() <{level = 10 : i32, message = "bij,bjf->bif"}> : () -> ()
    %cst_24 = arith.constant dense<0.000000e+00> : vector<1x16x8xf32>
    %52 = tpu.matmul %1, %51, %cst_24 {dimension_numbers = #tpu.dot_dimension_numbers<[2], [1], [1], [2], [0, 0, 0, 1, 1, 2], [0], [0]>} : vector<1x16x16xf32>, vector<1x16x8xf32>, vector<1x16x8xf32> -> vector<1x16x8xf32>
    "tpu.trace_stop"() : () -> ()
    %53 = vector.broadcast %0 : f32 to vector<1x16x8xf32>
    %54 = arith.mulf %53, %52 : vector<1x16x8xf32>
    %55 = arith.addf %54, %51 : vector<1x16x8xf32>
    %56 = vector.broadcast %8 : vector<1x16x1xf32> to vector<1x16x8xf32>
    %57 = arith.mulf %56, %55 : vector<1x16x8xf32>
    %c0_25 = arith.constant 0 : index
    %c0_26 = arith.constant 0 : index
    %58 = vector.load %arg9[%c0_25, %c0_26] : memref<1x8xf32, #tpu.memory_space<vmem>>, vector<1x8xf32>
    %59 = vector.shape_cast %58 : vector<1x8xf32> to vector<1x1x8xf32>
    %60 = vector.broadcast %59 : vector<1x1x8xf32> to vector<1x16x8xf32>
    %61 = arith.addf %57, %60 : vector<1x16x8xf32>
    %cst_27 = arith.constant 0.000000e+00 : f32
    %62 = vector.broadcast %cst_27 : f32 to vector<1x16x8xf32>
    %63 = arith.maximumf %61, %62 : vector<1x16x8xf32>
    %cst_28 = arith.constant dense<0.000000e+00> : vector<1x8xf32>
    %64 = vector.multi_reduction <add>, %63, %cst_28 [1] : vector<1x16x8xf32> to vector<1x8xf32>
    %cst_29 = arith.constant 1.600000e+01 : f32
    %65 = vector.broadcast %cst_29 : f32 to vector<1x8xf32>
    %66 = arith.divf %64, %65 : vector<1x8xf32>
    %c0_30 = arith.constant 0 : index
    %c0_31 = arith.constant 0 : index
    %67 = vector.load %arg10[%c0_30, %c0_31] : memref<8x192xf32, #tpu.memory_space<vmem>>, vector<8x192xf32>
    %cst_32 = arith.constant dense<0.000000e+00> : vector<1x192xf32>
    %68 = tpu.matmul %66, %67, %cst_32 {dimension_numbers = #tpu.dot_dimension_numbers<[1], [0], [0], [1], [0, 0, 1, 1], [], []>} : vector<1x8xf32>, vector<8x192xf32>, vector<1x192xf32> -> vector<1x192xf32>
    %c0_33 = arith.constant 0 : index
    %c0_34 = arith.constant 0 : index
    %69 = vector.load %arg11[%c0_33, %c0_34] : memref<1x192xf32, #tpu.memory_space<vmem>>, vector<1x192xf32>
    %70 = arith.addf %68, %69 : vector<1x192xf32>
    %c0_35 = arith.constant 0 : index
    %c0_36 = arith.constant 0 : index
    %c0_37 = arith.constant 0 : index
    %71 = vector.load %arg12[%c0_35, %c0_36, %c0_37] : memref<1x1x192xf32, #tpu.memory_space<vmem>>, vector<1x1x192xf32>
    %72 = vector.shape_cast %71 : vector<1x1x192xf32> to vector<1x192xf32>
    %73 = vector.shape_cast %70 : vector<1x192xf32> to vector<1x1x192xf32>
    tpu.vector_store %arg12[%c0_35, %c0_36, %c0_37], %73 {strides = array<i32>} : memref<1x1x192xf32, #tpu.memory_space<vmem>>, vector<1x1x192xf32>,
    return
  }
  func.func @transform_0(%arg0: i32) -> i32 {
    %c0_i32 = arith.constant 0 : i32
    %c0_i32_0 = arith.constant 0 : i32
    return %c0_i32 : i32
  }
  func.func @transform_1(%arg0: i32) -> (i32, i32, i32) {
    %c0_i32 = arith.constant 0 : i32
    %c0_i32_0 = arith.constant 0 : i32
    %c0_i32_1 = arith.constant 0 : i32
    return %arg0, %c0_i32, %c0_i32_0 : i32, i32, i32
  }
  func.func @transform_2(%arg0: i32) -> (i32, i32, i32) {
    %c0_i32 = arith.constant 0 : i32
    %c0_i32_0 = arith.constant 0 : i32
    %c0_i32_1 = arith.constant 0 : i32
    return %arg0, %c0_i32, %c0_i32_0 : i32, i32, i32
  }
  func.func @transform_3(%arg0: i32) -> (i32, i32) {
    %c0_i32 = arith.constant 0 : i32
    %c0_i32_0 = arith.constant 0 : i32
    %c0_i32_1 = arith.constant 0 : i32
    return %c0_i32, %c0_i32_0 : i32, i32
  }
  func.func @transform_4(%arg0: i32) -> (i32, i32) {
    %c0_i32 = arith.constant 0 : i32
    %c0_i32_0 = arith.constant 0 : i32
    %c0_i32_1 = arith.constant 0 : i32
    return %c0_i32, %c0_i32_0 : i32, i32
  }
  func.func @transform_5(%arg0: i32) -> (i32, i32) {
    %c0_i32 = arith.constant 0 : i32
    %c0_i32_0 = arith.constant 0 : i32
    %c0_i32_1 = arith.constant 0 : i32
    return %c0_i32, %c0_i32_0 : i32, i32
  }
  func.func @transform_6(%arg0: i32) -> (i32, i32) {
    %c0_i32 = arith.constant 0 : i32
    %c0_i32_0 = arith.constant 0 : i32
    %c0_i32_1 = arith.constant 0 : i32
    return %c0_i32, %c0_i32_0 : i32, i32
  }
  func.func @transform_7(%arg0: i32) -> (i32, i32) {
    %c0_i32 = arith.constant 0 : i32
    %c0_i32_0 = arith.constant 0 : i32
    %c0_i32_1 = arith.constant 0 : i32
    return %c0_i32, %c0_i32_0 : i32, i32
  }
  func.func @transform_8(%arg0: i32) -> (i32, i32) {
    %c0_i32 = arith.constant 0 : i32
    %c0_i32_0 = arith.constant 0 : i32
    %c0_i32_1 = arith.constant 0 : i32
    return %c0_i32, %c0_i32_0 : i32, i32
  }
  func.func @transform_9(%arg0: i32) -> (i32, i32) {
    %c0_i32 = arith.constant 0 : i32
    %c0_i32_0 = arith.constant 0 : i32
    %c0_i32_1 = arith.constant 0 : i32
    return %c0_i32, %c0_i32_0 : i32, i32
  }
  func.func @transform_10(%arg0: i32) -> (i32, i32) {
    %c0_i32 = arith.constant 0 : i32
    %c0_i32_0 = arith.constant 0 : i32
    %c0_i32_1 = arith.constant 0 : i32
    return %c0_i32, %c0_i32_0 : i32, i32
  }
  func.func @transform_11(%arg0: i32) -> (i32, i32, i32) {
    %c0_i32 = arith.constant 0 : i32
    %c0_i32_0 = arith.constant 0 : i32
    %c0_i32_1 = arith.constant 0 : i32
    return %arg0, %c0_i32, %c0_i32_0 : i32, i32, i32
  }
}

</mosaic_0001>

<bundles_post_ra>
// kernel: tpu_custom_call.1
= control target key start
LH: loop header
LB: loop body
LE: loop exit
PB: predicated region body
PF: predicated region fallthrough
CT: control target
= control target key end

     0   :  { %s1959_s0 = inlined_call_operand.<no memory space> [shape: f32[1], index: 0, kind: input, shape index: {}]   ;;  %s1960_s1 = inlined_call_operand.vmem [shape: f32[2,16,16], index: 1, kind: input, shape index: {}]   ;;  %s1961_s2 = inlined_call_operand.vmem [shape: f32[2,16,16], index: 2, kind: input, shape index: {}]   ;;  %s1962_s3 = inlined_call_operand.hbm [shape: f32[16,32], index: 3, kind: input, shape index: {}]   ;;  %s1963_s4 = inlined_call_operand.hbm [shape: f32[1,32], index: 4, kind: input, shape index: {}]   ;;  %s1964_s5 = inlined_call_operand.vmem [shape: f32[32,16], index: 5, kind: input, shape index: {}]   ;;  %s1965_s6 = inlined_call_operand.hbm [shape: f32[1,16], index: 6, kind: input, shape index: {}]   ;;  %s1966_s7 = inlined_call_operand.vmem [shape: f32[16,8], index: 7, kind: input, shape index: {}]   ;;  %s1967_s8 = inlined_call_operand.vmem [shape: f32[1,8], index: 8, kind: input, shape index: {}]   ;;  %s1968_s9 = inlined_call_operand.vmem [shape: f32[8,192], index: 9, kind: input, shape index: {}]   ;;  %s1969_s10 = inlined_call_operand.vmem [shape: f32[1,192], index: 10, kind: input, shape index: {}]   ;;  %s1970_s11 = inlined_call_operand.hbm [shape: f32[2,1,192], index: 11, kind: output, shape index: {}]  }
   0x1   :  { %1978 = sst [smem:[#allocation17_spill]] %s1963_s4 }
   0x2   :  { %16 = sst [smem:[#allocation2]] %s1959_s0 }
   0x3   :  { %17 = vsyncpa [#allocation4], 0 }
   0x4   :  { %18 = vsyncpa [#allocation7], 0 }
   0x5   :  { %19 = vsyncpa [#allocation5], 0 }
   0x6   :  { %21 = vsyncpa [#allocation5 + $0x1], 0  ;;  %s1689_s19 = smov 0   ;;  %s1691_s20 = smov 0  }
   0x7   :  { %s1693_s21 = smov 0   ;;  %s1695_s22 = smov 0  }
   0x8 LB: > { %1979 = sst [smem:[#allocation13_spill]] %s1612_s21  ;;  %s1710_s0 = sadd.s32 4294967295, %s1616_s22   ;;  %s1616_s22 = sphi %s1695_s22, %s1997_s22   ;;  %s1612_s21 = sphi %s1693_s21, %s1999_s21   ;;  %s1608_s20 = sphi %s1691_s20, %s2001_s20   ;;  %s1604_s19 = sphi %s1689_s19, %s2000_s19  }
   0x9   : > { %s1245_s23 = sadd.s32 4294967294, %s1616_s22   ;;  %s1714_s24 = sadd.s32 1, %s1616_s22  }
   0xa   : > { %1980 = sst [smem:[#allocation14_spill]] %s1714_s24  ;;  %s275_s25 = sadd.s32 1, %s1612_s21 }
   0xb   : > { %s272_s26 = ssub.s32 %s1616_s22, %s1714_s24  ;;  %p285_p0 = scmp.ne.s32.totalorder %s1612_s21, %s1608_s20 }
   0xc   : > { %p273_p1 = scmp.eq.s32.totalorder %s272_s26, 0  ;;  %p286_p2 = scmp.eq.s32.totalorder %s1710_s0, 1 }
   0xd   : > { %p291_p3 = scmp.ne.s32.totalorder %s1608_s20, %s1604_s19  ;;  %p292_p4 = scmp.eq.s32.totalorder %s1245_s23, 1 }
   0xe   : > { %s1725_s27 = scalar_select %p273_p1, %s1612_s21, %s275_s25  }
   0xf   : > { %p1727_p5 = por %p286_p2, %p285_p0  ;;  %p1731_p6 = por %p292_p4, %p291_p3 }
  0x10   : > { %1981 = sst [smem:[#allocation15_spill]] %s1725_s27  ;;  %p1246_p7 = scmp.ge.s32.totalorder %s1616_s22, 1 }
  0x11   : > { %s1982_s28 = scalar_select %p1727_p5, 1, 0 }
  0x12   : > { %s1983_s29 = scalar_select %p1731_p6, 1, 0 }
  0x13   : > { %p299_p8 = scmp.lt.s32.totalorder %s1616_s22, 3  ;;  %p1972_p9 = scmp.eq.s32.totalorder %s1710_s0, 0 }
  0x14   : > { %1984 = sst [smem:[#allocation16_spill]] %s1983_s29  ;;  %s1618_s12 = smov [#allocation6]  }
  0x15   : > { %p1738_p10 = pnand %p1246_p7, %p299_p8  ;;  %s328_s13 = sshll.u32 %s1618_s12, 4  ;;  %s329_s13 = int_to_ptr.vmem [resolvable:$true] %s328_s13 }
  0x16   : > { %s1619_s14 = smov [#allocation3]   ;;  %s1620_s17 = smov [#allocation8]  }
  0x17   : > { %s1985_s30 = scalar_select %p1738_p10, 1, 0 }
  0x18   : > { %p1398_p11 = pneg %p1738_p10  ;;  %s314_s15 = sshll.u32 %s1619_s14, 4  ;;  %s1750_s15 = int_to_ptr.vmem [resolvable:$true] %s314_s15 }
  0x19   : > { %s1752_s18 = sshll.u32 %s1620_s17, 4  ;;  %s1987_s4 = sld [smem:[#allocation17_spill]]  ;;  %s343_s18 = int_to_ptr.vmem [resolvable:$true] %s1752_s18 }
  0x1a   : > { %p1746_p12 = pnand %p1972_p9, %p1398_p11 }
  0x1c   : > { %p1762_p0 = pneg %p1746_p12 }
  0x1f   : > { %s1462_s26 = scalar_lea.hbm %s1987_s4, 16 }
  0x20   : > { %p1463_p13 = scmp.ne.s32.totalorder %s1987_s4, %s1462_s26  ;;  %p1469_p3 = scmp.lt.u32.totalorder %s1462_s26, %s1987_s4 }
  0x22   : > { %p1465_p1 = pnand %p1762_p0, %p1463_p13 }
  0x24   : > { %p1466_p2 = pneg %p1465_p1 }
  0x26   : > { %p1471_p4 = pnand %p1469_p3, %p1466_p2 }
  0x28   : > { %1474 = shalt.err (!%p1471_p4)
}
  0x29   : > { %s1475_s23 = scalar_lea.vmem %s329_s13, 16  ;;  %s1482_s27 = scalar_lea.vmem %s329_s13, 32 }
  0x2a   : > { %p1476_p7 = scmp.ne.s32.totalorder %s329_s13, %s1475_s23  ;;  %p1483_p9 = scmp.lt.s32.totalorder %s329_s13, %s329_s13 }
  0x2b   : > { %p1484_p6 = scmp.lt.s32.totalorder %s1482_s27, %s1475_s23 }
  0x2c   : > { %p1478_p8 = pnand %p1476_p7, %p1762_p0 }
  0x2d   : > { %p1485_p5 = por %p1484_p6, %p1483_p9 }
  0x2e   : > { %p1479_p11 = pneg %p1478_p8 }
  0x30   : > { %p1486_p10 = pnand %p1485_p5, %p1479_p11 }
  0x32   : > { %1489 = shalt.err (!%p1486_p10)
}
  0x33   : > { %1404 = dma.hbm_to_vmem [thread:$0]  (!%p1746_p12), %s1987_s4, 16, %s329_s13, [#allocation7]  }
  0x34   : > { %s1490_s17 = scalar_lea.hbm %s1962_s3, 256 }
  0x35   : > { %p1491_p13 = scmp.ne.s32.totalorder %s1962_s3, %s1490_s17  ;;  %p1497_p5 = scmp.lt.u32.totalorder %s1490_s17, %s1962_s3 }
  0x37   : > { %p1493_p1 = pnand %p1491_p13, %p1762_p0 }
  0x39   : > { %p1494_p6 = pneg %p1493_p1 }
  0x3b   : > { %p1499_p9 = pnand %p1497_p5, %p1494_p6 }
  0x3d   : > { %1502 = shalt.err (!%p1499_p9)
}
  0x3e   : > { %s1503_s13 = scalar_lea.vmem %s1750_s15, 256  ;;  %p1511_p4 = scmp.lt.s32.totalorder %s1750_s15, %s1750_s15 }
  0x3f   : > { %p1504_p10 = scmp.ne.s32.totalorder %s1750_s15, %s1503_s13  ;;  %p1512_p7 = scmp.lt.s32.totalorder %s1503_s13, %s1503_s13 }
  0x41   : > { %p1506_p2 = pnand %p1504_p10, %p1762_p0  ;;  %p1513_p8 = por %p1512_p7, %p1511_p4 }
  0x43   : > { %p1507_p3 = pneg %p1506_p2 }
  0x45   : > { %p1514_p11 = pnand %p1513_p8, %p1507_p3 }
  0x47   : > { %1517 = shalt.err (!%p1514_p11)
}
  0x48   : > { %s1621_s24 = smov 128   ;;  %s1622_s29 = smov 8  }
  0x49   : > { %1401 = dma.hbm_to_vmem [thread:$0]  (!%p1746_p12), %s1962_s3, 256, %s1750_s15, [#allocation4], %s1621_s24, %s1621_s24, %s1622_s29  }
  0x4a   : > { %s1518_s17 = scalar_lea.hbm %s1965_s6, 16 }
  0x4b   : > { %p1519_p13 = scmp.ne.s32.totalorder %s1965_s6, %s1518_s17  ;;  %p1525_p5 = scmp.lt.u32.totalorder %s1518_s17, %s1965_s6 }
  0x4d   : > { %p1521_p1 = pnand %p1519_p13, %p1762_p0 }
  0x4f   : > { %p1522_p6 = pneg %p1521_p1 }
  0x51   : > { %p1527_p9 = pnand %p1525_p5, %p1522_p6 }
  0x53   : > { %1530 = shalt.err (!%p1527_p9)
}
  0x54   : > { %s1531_s25 = scalar_lea.vmem %s343_s18, 16  ;;  %s1538_s15 = scalar_lea.vmem %s343_s18, 32 }
  0x55   : > { %p1532_p10 = scmp.ne.s32.totalorder %s343_s18, %s1531_s25  ;;  %p1539_p4 = scmp.lt.s32.totalorder %s343_s18, %s343_s18 }
  0x56   : > { %p1540_p7 = scmp.lt.s32.totalorder %s1538_s15, %s1531_s25 }
  0x57   : > { %p1534_p2 = pnand %p1532_p10, %p1762_p0 }
  0x58   : > { %p1541_p8 = por %p1540_p7, %p1539_p4 }
  0x59   : > { %p1535_p3 = pneg %p1534_p2 }
  0x5b   : > { %p1542_p11 = pnand %p1541_p8, %p1535_p3 }
  0x5d   : > { %1545 = shalt.err (!%p1542_p11)
}
  0x5e   : > { %1407 = dma.hbm_to_vmem [thread:$0]  (!%p1746_p12), %s1965_s6, 16, %s343_s18, [#allocation7]  }
  0x5f   : > { %p1989_p13 = scmp.ne.s32.totalorder %s1985_s30, 0 }
  0x60   : > { %p1990_p1 = scmp.eq.s32.totalorder (!%p1989_p13), %s1710_s0, 0 }
  0x61   : > { %383 = sbr.rel (%p1989_p13) target bundleno = 1703 (0x6a7), region = 64 }
  0x68   : > { %1591 = dma.done.wait (%p1990_p1), [#allocation4], 256   ;;  %p1991_p0 = pmov %p1990_p1 }
  0x6a   : > { %1593 = vsyncadd (%p1991_p0), [#allocation4], 4294967040  ;;  %p1992_p6 = pmov %p1991_p0 }
  0x6b   : > { %p1993_p5 = pmov %p1991_p0 }
  0x6c   : > { %1595 = dma.done.wait (%p1992_p6), [#allocation7], 32  }
  0x6d   : > { %1597 = vsyncadd (%p1993_p5), [#allocation7], 4294967264  ;;  %p436_p9 = scmp.lt.s32.totalorder %s1710_s0, 1  ;;  %vm449_vm0 = vcmask 130048   ;;  %v465_v0 = vld [vmem:[#allocation3] sm:$0xff]  ;;  %v466_v1 = vld [vmem:[#allocation3 + $0x8] sm:$0xff] }
  0x6e   : > { %v1356_v3 = vpack.c.bf16 %v466_v1, %v465_v0  ;;  %s446_s17 = sld [smem:[#allocation2]]  ;;  %v648_v23 = vld [vmem:[%s1964_s5] sm:$0xff]  ;;  %v649_v24 = vld [vmem:[%s1964_s5 + $0x8] sm:$0xff]  ;;  %v650_v26 = vld [vmem:[%s1964_s5 + $0x10] sm:$0xff]  ;;  %vm652_vm1 = vcmask 261120   ;;  %vm1005_vm2 = vcmask 64512  }
  0x6f   : > { %s437_s4 = scalar_select %p436_p9, %s1710_s0, 1  ;;  %v1364_v25 = vpack.c.bf16 %v649_v24, %v648_v23  ;;  %v651_v27 = vld [vmem:[%s1964_s5 + $0x18] sm:$0xff]  ;;  %v1264_v34 = vld [vmem:[#allocation6] ss:$0 sm:$0xff]  ;;  %v828_v47 = vld [vmem:[%s1966_s7] sm:$0xff] }
  0x70   : > { %1357 = vmatprep.subr.bf16.mxu0 %v1356_v3  ;;  %v1368_v28 = vpack.c.bf16 %v651_v27, %v650_v26  ;;  %v829_v48 = vld [vmem:[%s1966_s7 + $0x8] sm:$0xff]  ;;  %v1269_v55 = vld [vmem:[#allocation8] ss:$0 sm:$0xff]  ;;  %s433_s15 = sand.u32 1, %s1608_s20   ;;  %s1283_s29 = sshll.u32 %s1710_s0, 5 }
  0x71   : > { %s1281_s16 = sshll.u32 %s437_s4, 4  ;;  %1359 = vmatpush3.bf16.msra.mxu0 %v1356_v3  ;;  %v1376_v49 = vpack.c.bf16 %v829_v48, %v828_v47  ;;  %s1255_s24 = sshll.u32 %s433_s15, 1 }
  0x72   : > { %s440_s14 = scalar_lea.vmem %s1960_s1, %s1281_s16  ;;  %s445_s26 = scalar_lea.vmem %s1961_s2, %s1281_s16  ;;  %1365 = vmatprep.subr.bf16.mxu0 %v1364_v25 }
  0x73   : > { %v463_v2 = vld [vmem:[%s440_s14] sm:$0xff]  ;;  %v1839_v5 = vld [vmem:[%s445_s26 + $0x8] sm:$0xff]  ;;  %s435_s4 = scalar_lea.vmem [#allocation9], %s1255_s24  ;;  %s1129_s12 = scalar_lea.sflag [#allocation5], %s433_s15 }
  0x74   : > { %1314 = vmatprep.mubr.msk.f32.mxu0 %vm449_vm0, %v463_v2  ;;  %v447_v4 = vld [vmem:[%s445_s26] sm:$0xff]  ;;  %v464_v7 = vld [vmem:[%s440_s14 + $0x8] sm:$0xff]  ;;  %v453_v8 = vsel %vm449_vm0, %v1839_v5, 0.0  ;;  %v1846_v11 = vstv %s446_s17  ;;  %s1143_s16 = sshll.u32 %s435_s4, 4  ;;  %s1917_s14 = scalar_lea.hbm %s1970_s11, %s1283_s29  ;;  %s1919_s16 = int_to_ptr.vmem [resolvable:$true] %s1143_s16 }
  0x75   : > { %v450_v6 = vsel %vm449_vm0, %v447_v4, 0.0  ;;  %1321 = vmatprep.mubr.msk.f32.mxu1 %vm449_vm0, %v447_v4  ;;  %1315 = vmatmul.mubr.msk.f32.vlgmr.msra.gmra.mrb[0].mxu0 %vm449_vm0, %v464_v7  ;;  %v1623_v7 = vmov 0.0   ;;  %s1546_s21 = scalar_lea.vmem %s1919_s16, 32  ;;  %p1994_p10 = scmp.ne.s32.totalorder %s1982_s28, 0 }
  0x76   : > { %451 = vadd.xlane.f32.xlu0 %v450_v6  ;;  %1367 = vmatpush3.bf16.msra.mxu0 %v1364_v25  ;;  %v1017_v6 = vld [vmem:[%s1968_s9] sm:$0xff]  ;;  %p1547_p12 = scmp.ne.s32.totalorder %s1919_s16, %s1546_s21  ;;  %s1625_s0 = smov [#allocation9]  }
  0x77   : > { %1369 = vmatprep.subr.bf16.mxu0 %v1368_v28  ;;  %s1550_s26 = sshll.u32 %s1625_s0, 4  ;;  %s1551_s26 = int_to_ptr.vmem [resolvable:$false] %s1550_s26 }
  0x78   : > { %p1548_p2 = pnand %p1547_p12, %p1994_p10  ;;  %s1552_s17 = scalar_lea.vmem %s1551_s26, 64 }
  0x79   : > { %p1553_p4 = scmp.lt.s32.totalorder %s1919_s16, %s1551_s26  ;;  %p1554_p7 = scmp.lt.s32.totalorder %s1552_s17, %s1546_s21 }
  0x7a   : > { %454 = vadd.xlane.f32.xlu0 %v453_v8  ;;  %1371 = vmatpush3.bf16.msra.mxu0 %v1368_v28  ;;  %p1549_p3 = pneg %p1548_p2 }
  0x7b   : > { %p1555_p8 = por %p1554_p7, %p1553_p4 }
  0x7d   : > { %p1556_p11 = pnand %p1555_p8, %p1549_p3 }
 0x103   : > { %v452_v9 = vpop.xlane.xlu0 %451 }
 0x104   : > { %v457_v13 = vmul.f32 %v1846_v11, %v452_v9 }
 0x106   : > { %v459_v15 = vadd.f32 1.0, %v457_v13 }
 0x107   : > { %v455_v10 = vpop.xlane.xlu0 %454 }
 0x108   : > { %v458_v12 = vmul.f32 %v1846_v11, %v455_v10 }
 0x10a   : > { %v460_v14 = vadd.f32 1.0, %v458_v12 }
 0x10c   : > { %1458 = vrsqrt.f32 %v460_v14 }
 0x10d   : > { %1460 = vrsqrt.f32 %v459_v15 }
 0x116   : > { %v1850_v16 = vpop.eup %1458 }
 0x117   : > { %v1852_v18 = vpop.eup %1460 }
 0x148   : > { %v1316_v17 = vpop.f32.mrb[0].mxu0 }
 0x149   : > { %v549_v19 = vmul.f32 %v1850_v16, %v1316_v17  ;;  %v539_v20 = vpop.f32.mrb[1].mxu0 }
 0x14a   : > { %v548_v21 = vmul.f32 %v1852_v18, %v539_v20 }
 0x14c   : > { %v1360_v22 = vpack.c.bf16 %v549_v19, %v548_v21 }
 0x14e   : > { %1361 = vmatprep.subr.bf16.mxu1 %v1360_v22 }
 0x14f   : > { %1363 = vmatpush3.bf16.msra.mxu1 %v1360_v22 }
 0x152   : > { %1322 = vmatmul.mubr.msk.f32.vlgmr.msra.gmra.mrb[0].mxu1 %vm449_vm0, %v1839_v5 }
 0x153   : > { %1339 = vmatprep.mubr.msk.f32.mxu1 %vm449_vm0, %v447_v4 }
 0x225   : > { %v1323_v29 = vpop.f32.mrb[0].mxu1 }
 0x226   : > { %v632_v30 = vmul.f32 %v1323_v29, %v1846_v11  ;;  %v622_v31 = vpop.f32.mrb[1].mxu1 }
 0x227   : > { %v631_v32 = vmul.f32 %v622_v31, %v1846_v11 }
 0x228   : > { %v634_v33 = vadd.f32 %v632_v30, %v549_v19 }
 0x229   : > { %v633_v35 = vadd.f32 %v631_v32, %v548_v21 }
 0x22a   : > { %v636_v36 = vmul.f32 %v1850_v16, %v634_v33  ;;  %v1019_v33 = vld [vmem:[%s1969_s10] sm:$0x3] }
 0x22b   : > { %v635_v37 = vmul.f32 %v1852_v18, %v633_v35  ;;  %v1624_v35 = vmov 1966171168  }
 0x22c   : > { %v645_v38 = vadd.f32 %v1264_v34, %v636_v36  ;;  %v1109_v36 = vunpack.c.l.s4 %v1624_v35 }
 0x22d   : > { %v644_v39 = vadd.f32 %v1264_v34, %v635_v37 }
 0x22e   : > { %v647_v41 = vmax.f32 %v645_v38, 0.0 }
 0x22f   : > { %v646_v40 = vmax.f32 %v644_v39, 0.0  ;;  %v1110_v39 = vunpack.c.0.s8 %v1109_v36 }
 0x231   : > { %1332 = vmatprep.mubr.msk.f32.mxu0 %vm652_vm1, %v646_v40 }
 0x232   : > { %1333 = vmatmul.mubr.msk.f32.vlgmr.msra.gmra.mrb[2].mxu0 %vm652_vm1, %v647_v41 }
 0x233   : > { %1353 = vmatprep.mubr.msk.f32.mxu0 %vm449_vm0, %v447_v4  ;;  %v1018_v4 = vld [vmem:[%s1968_s9 + $0x8] sm:$0xff] }
 0x305   : > { %v1334_v42 = vpop.f32.mrb[2].mxu0 }
 0x306   : > { %v735_v43 = vmul.f32 %v1850_v16, %v1334_v42  ;;  %v725_v44 = vpop.f32.mrb[3].mxu0 }
 0x307   : > { %v734_v45 = vmul.f32 %v1852_v18, %v725_v44 }
 0x309   : > { %v1372_v46 = vpack.c.bf16 %v735_v43, %v734_v45 }
 0x30b   : > { %1373 = vmatprep.subr.bf16.mxu1 %v1372_v46 }
 0x30c   : > { %1375 = vmatpush3.bf16.msra.mxu1 %v1372_v46 }
 0x30d   : > { %1377 = vmatprep.subr.bf16.mxu1 %v1376_v49 }
 0x30f   : > { %1340 = vmatmul.mubr.msk.f32.vlgmr.msra.gmra.mrb[2].mxu1 %vm449_vm0, %v1839_v5 }
 0x310   : > { %1379 = vmatpush3.bf16.msra.mxu1 %v1376_v49 }
 0x311   : > { %1034 = vmatprep.subr.mxu1 %v1018_v4 }
 0x3e2   : > { %v1341_v50 = vpop.f32.mrb[2].mxu1 }
 0x3e3   : > { %v812_v51 = vmul.f32 %v1341_v50, %v1846_v11  ;;  %v802_v52 = vpop.f32.mrb[3].mxu1 }
 0x3e4   : > { %v811_v53 = vmul.f32 %v802_v52, %v1846_v11 }
 0x3e5   : > { %v814_v54 = vadd.f32 %v812_v51, %v735_v43 }
 0x3e6   : > { %v813_v56 = vadd.f32 %v811_v53, %v734_v45 }
 0x3e7   : > { %v816_v57 = vmul.f32 %v1850_v16, %v814_v54 }
 0x3e8   : > { %v815_v58 = vmul.f32 %v1852_v18, %v813_v56 }
 0x3e9   : > { %v825_v59 = vadd.f32 %v1269_v55, %v816_v57 }
 0x3ea   : > { %v824_v60 = vadd.f32 %v1269_v55, %v815_v58 }
 0x3eb   : > { %v827_v62 = vmax.f32 %v825_v59, 0.0 }
 0x3ec   : > { %v826_v61 = vmax.f32 %v824_v60, 0.0 }
 0x3ee   : > { %1346 = vmatprep.mubr.msk.f32.mxu1 %vm449_vm0, %v826_v61 }
 0x3ef   : > { %1347 = vmatmul.mubr.msk.f32.vlgmr.msra.gmra.mrb[4].mxu1 %vm449_vm0, %v827_v62 }
 0x3f0   : > { %1098 = vmatprep.mubr.f32.mxu1 %v1623_v7  ;;  %1035 = vmatpush1.msra.mxu1 %v1017_v6 }
 0x4c2   : > { %v1348_v63 = vpop.f32.mrb[4].mxu1 }
 0x4c3   : > { %v912_v0 = vmul.f32 %v1850_v16, %v1348_v63  ;;  %v902_v1 = vpop.f32.mrb[5].mxu1 }
 0x4c4   : > { %v911_v2 = vmul.f32 %v1852_v18, %v902_v1 }
 0x4c6   : > { %v1380_v3 = vpack.c.bf16 %v912_v0, %v911_v2 }
 0x4c8   : > { %1381 = vmatprep.subr.bf16.mxu0 %v1380_v3 }
 0x4c9   : > { %1383 = vmatpush3.bf16.msra.mxu0 %v1380_v3 }
 0x4cc   : > { %1354 = vmatmul.mubr.msk.f32.vlgmr.msra.gmra.mrb[4].mxu0 %vm449_vm0, %v1839_v5  ;;  %v1274_v5 = vld [vmem:[%s1967_s8] ss:$0 sm:$0xff] }
 0x59f   : > { %v1355_v8 = vpop.f32.mrb[4].mxu0 }
 0x5a0   : > { %v989_v9 = vmul.f32 %v1355_v8, %v1846_v11  ;;  %v979_v10 = vpop.f32.mrb[5].mxu0 }
 0x5a1   : > { %v988_v12 = vmul.f32 %v979_v10, %v1846_v11 }
 0x5a2   : > { %v991_v13 = vadd.f32 %v989_v9, %v912_v0 }
 0x5a3   : > { %v990_v14 = vadd.f32 %v988_v12, %v911_v2 }
 0x5a4   : > { %v993_v15 = vmul.f32 %v1850_v16, %v991_v13  ;;  %v1021_v16 = vlaneseq }
 0x5a5   : > { %v992_v17 = vmul.f32 %v1852_v18, %v990_v14 }
 0x5a6   : > { %v1002_v19 = vadd.f32 %v1274_v5, %v993_v15  ;;  %v1022_v32 = vshrl.u32 %v1021_v16, 7  ;;  %vm1125_vm3 = vcmp.lt.s32.totalorder %v1021_v16, 192 }
 0x5a7   : > { %v1001_v20 = vadd.f32 %v1274_v5, %v992_v17 }
 0x5a8   : > { %v1004_v21 = vmax.f32 %v1002_v19, 0.0  ;;  %v1023_v18 = vsub.s32 0, %v1022_v32  ;;  %v1027_v34 = vsub.s32 1, %v1022_v32  ;;  %v1113_v44 = vsub.s32 %v1110_v39, %v1022_v32 }
 0x5a9   : > { %v1003_v22 = vmax.f32 %v1001_v20, 0.0 }
 0x5aa   : > { %v1007_v23 = vsel %vm1005_vm2, %v1004_v21, 0.0  ;;  %v1024_v37 = vrot.slane %v1019_v33, %v1023_v18  ;;  %v1028_v38 = vrot.slane %v1019_v33, %v1027_v34 }
 0x5ab   : > { %v1006_v24 = vsel %vm1005_vm2, %v1003_v22, 0.0 }
 0x5ac   : > { %v1008_v25 = vadd.f32 %v1007_v23, %v1006_v24 }
 0x5ae   : > { %v1009_v11 = vrot.slane %v1008_v25, 4 }
 0x5b0   : > { %v1010_v26 = vadd.f32 %v1009_v11, %v1008_v25 }
 0x5b2   : > { %v1011_v27 = vrot.slane %v1010_v26, 2 }
 0x5b4   : > { %v1012_v28 = vadd.f32 %v1011_v27, %v1010_v26 }
 0x5b6   : > { %v1013_v29 = vrot.slane %v1012_v28, 1 }
 0x5b8   : > { %v1014_v30 = vadd.f32 %v1013_v29, %v1012_v28 }
 0x5ba   : > { %v1016_v31 = vmul.f32 0.0625, %v1014_v30 }
 0x5bc   : > { %1275 = vmatmul.mubr.msk.f32.vlgmr.msra.gmra.mrb[6].mxu1 %vm1005_vm2, %v1016_v31 }
 0x68f   : > { %v1100_v40 = vpop.f32.mrb[6].mxu1 }
 0x690   : > { %v1101_v41 = vadd.f32 %v1100_v40, %v1024_v37  ;;  %v1102_v42 = vpop.f32.mrb[7].mxu1 }
 0x691   : > { %v1103_v43 = vadd.f32 %v1102_v42, %v1028_v38 }
 0x693   : > { %v1107_v45 = vcombine.low %v1101_v41, %v1103_v43 }
 0x695   : > { %v1114_v46 = vrot.slane %v1107_v45, %v1113_v44 }
 0x697   : > { %v1121_v47 = vrot.slane %v1114_v46, %v1113_v44 }
 0x699   : > { %1127 = vst.msk [vmem:[%s435_s4] sm:$0x3] %vm1125_vm3, %v1121_v47 }
 0x69a   : > { %1559 = shalt.err (!%p1556_p11)
}
 0x69b   : > { %s1560_s23 = scalar_lea.hbm %s1917_s14, 32  ;;  %s1564_s25 = scalar_lea.hbm %s1970_s11, 64 }
 0x69c   : > { %p1561_p13 = scmp.ne.s32.totalorder %s1917_s14, %s1560_s23  ;;  %p1565_p6 = scmp.lt.u32.totalorder %s1917_s14, %s1970_s11 }
 0x69d   : > { %p1566_p5 = scmp.lt.u32.totalorder %s1564_s25, %s1560_s23  ;;  %p1568_p12 = scmp.lt.u32.totalorder %s1560_s23, %s1917_s14 }
 0x69e   : > { %p1562_p1 = pnand %p1561_p13, %p1994_p10 }
 0x69f   : > { %p1567_p9 = por %p1566_p5, %p1565_p6 }
 0x6a0   : > { %p1563_p0 = pneg %p1562_p1 }
 0x6a1   : > { %p1569_p2 = por %p1568_p12, %p1567_p9 }
 0x6a3   : > { %p1570_p3 = pnand %p1569_p2, %p1563_p0 }
 0x6a5   : > { %1573 = shalt.err (!%p1570_p3)
}
 0x6a6   : > { %1396 = dma.vmem_to_hbm [thread:$0]  (%p1994_p10), %s1919_s16, 32, %s1917_s14, %s1129_s12  }
 0x6a7 PF: > { %s1995_s29 = sld [smem:[#allocation16_spill]]  ;;  %p1418_p4 = scmp.ge.s32.totalorder %s1616_s22, 2 }
 0x6a8   : > { %s1155_s4 = sand.u32 1, %s1604_s19  }
 0x6a9   : > { %s1156_s18 = scalar_lea.sflag [#allocation5], %s1155_s4 }
 0x6ad   : > { %p1996_p7 = scmp.ne.s32.totalorder %s1995_s29, 0 }
 0x6af   : > { %p1409_p8 = pnand %p1418_p4, %p1996_p7 }
 0x6b1   : > { %1599 = dma.done.wait (!%p1409_p8), %s1156_s18, 32  }
 0x6b2   : > { %1601 = vsyncadd (!%p1409_p8), %s1156_s18, 4294967264  ;;  %s1997_s22 = sld [smem:[#allocation14_spill]]  ;;  %s1998_s30 = sld [smem:[#allocation13_spill]] }
 0x6b3   : > { %s1999_s21 = sld [smem:[#allocation15_spill]]  ;;  %s2000_s19 = smov %s1608_s20 }
 0x6b8   : > { %p24_p11 = scmp.ge.s32.totalorder %s1997_s22, 4   ;;  %s2001_s20 = smov %s1998_s30 }
 0x6ba   :  { %26 = sbr.rel (!%p24_p11) target bundleno = 8 (0x8), region = 115 }
 0x6c1   :  { %1161 = vsyncpa [#allocation4], 1 }
 0x6c2   :  { %1163 = vsyncpa [#allocation4 + $0x1], 1 }
 0x6c3   :  { %1164 = vsyncpa [#allocation7], 1 }
 0x6c4   :  { %1165 = vsyncpa [#allocation5], 1 }
 0x6c5   :  { %1167 = vsyncpa [#allocation5 + $0x1], 1 }

</bundles_post_ra>
